<compile_context>
chip_gen: v7x
topology: tpu7x:2x2x1
jax: 0.10.0
libtpu: 0.0.40
codegen_flags: <defaults>
</compile_context>

<pallas_src>
import functools

import jax
import jax.numpy as jnp
from jax.experimental import pallas as pl
from jax.experimental.pallas import tpu as pltpu


def _default_vmem_limit():
    try:
        cap = int(pltpu.get_tpu_info().vmem_capacity_bytes)
    except Exception:
        cap = 64 * 1024 * 1024  # conservative fallback (safe on v7x)
    return int(min(cap * 0.7, 96 * 1024 * 1024))


_VMEM_LIMIT = _default_vmem_limit()


# ----------------------------------------------------------------------------
# Tile-selection helpers (all run at trace time on static shapes).
# ----------------------------------------------------------------------------
def _sublane_unit(dtype):
    return {4: 8, 2: 16, 1: 32}.get(jnp.dtype(dtype).itemsize, 8)


def _channel_tile(c, unit, fits):
    """Pick a channel tile: sublane-aligned divisors of c (or c itself).
    Prefer the largest tile that `fits`, and among those prefer leaving
    >= 2 channel tiles so the parallel C axis can use both v7x TensorCores."""
    cands = [d for d in range(unit, c + 1, unit) if c % d == 0] or [c]
    fitting = [d for d in cands if fits(d)]
    if not fitting:
        return None
    multi = [d for d in fitting if c // d >= 2]
    return max(multi) if multi else max(fitting)


def _largest_divisor_leq(n, limit):
    limit = max(1, min(n, limit))
    for d in range(limit, 0, -1):
        if n % d == 0:
            return d
    return 1


def _largest_aligned_divisor_leq(n, unit, limit):
    best, d = None, unit
    while d <= limit:
        if n % d == 0:
            best = d
        d += unit
    return best


# ----------------------------------------------------------------------------
# Kernels
# ----------------------------------------------------------------------------
def _bn_fused_kernel(x_ref, g_ref, b_ref, o_ref, *, inv_m, eps):
    """Single pass: stats + normalize from one resident (n, tc, hw) slab."""
    x = x_ref[...].astype(jnp.float32)                          # (n, tc, hw)
    s = jnp.sum(jnp.sum(x, axis=2, keepdims=True), axis=0)      # (tc, 1)
    mean = s * inv_m
    d = x - mean
    q = jnp.sum(jnp.sum(d * d, axis=2, keepdims=True), axis=0)  # (tc, 1)
    var = q * inv_m                                              # biased var
    scale = g_ref[...] * jax.lax.rsqrt(var + eps)
    o_ref[...] = (d * scale + b_ref[...]).astype(o_ref.dtype)


def _bn_stats_kernel(x_ref, psum_ref, psq_ref, *, thw, pw, hw, ragged):
    """Accumulate lane-dense per-channel partial sums (tc, pw) in f32.

    The spatial tile is folded into a pw(=128)-wide accumulator with plain
    VPU adds (tile-aligned lane-chunk slices); the single cross-lane reduce
    to (c,) happens later in JAX.
    """
    ni = pl.program_id(1)
    hi = pl.program_id(2)

    @pl.when((ni == 0) & (hi == 0))
    def _():
        psum_ref[...] = jnp.zeros_like(psum_ref)
        psq_ref[...] = jnp.zeros_like(psq_ref)

    tc = psum_ref.shape[0]
    n_chunks = thw // pw

    def body(j, carry):
        s, q = carry
        off = pl.multiple_of(j * pw, pw)
        blk = x_ref[:, :, pl.ds(off, pw)].astype(jnp.float32)   # (tn, tc, pw)
        if ragged:
            lane = jax.lax.broadcasted_iota(jnp.int32, blk.shape, blk.ndim - 1)
            blk = jnp.where(hi * thw + off + lane < hw, blk, 0.0)
        s = s + jnp.sum(blk, axis=0)                            # VPU adds
        q = q + jnp.sum(blk * blk, axis=0)
        return s, q

    init = (jnp.zeros((tc, pw), jnp.float32), jnp.zeros((tc, pw), jnp.float32))
    s, q = jax.lax.fori_loop(0, n_chunks, body, init, unroll=min(n_chunks, 8))
    psum_ref[...] += s
    psq_ref[...] += q


def _bn_apply_kernel(x_ref, scale_ref, shift_ref, o_ref):
    """y = x * scale + shift with per-channel (tc,1) constants (pre-folded)."""
    x = x_ref[...].astype(jnp.float32)                          # (tn, tc, thw)
    o_ref[...] = (x * scale_ref[...] + shift_ref[...]).astype(o_ref.dtype)


# ----------------------------------------------------------------------------
# pallas_call wrappers
# ----------------------------------------------------------------------------
def _pallas_bn_fused(x3, g, b, *, eps, tc):
    n, c, hw = x3.shape
    inv_m = 1.0 / float(n * hw)
    return pl.pallas_call(
        functools.partial(_bn_fused_kernel, inv_m=inv_m, eps=eps),
        out_shape=jax.ShapeDtypeStruct((n, c, hw), x3.dtype),
        grid=(c // tc,),
        in_specs=[pl.BlockSpec((n, tc, hw), lambda ci: (0, ci, 0)),
                  pl.BlockSpec((tc, 1), lambda ci: (ci, 0)),
                  pl.BlockSpec((tc, 1), lambda ci: (ci, 0))],
        out_specs=pl.BlockSpec((n, tc, hw), lambda ci: (0, ci, 0)),
        compiler_params=pltpu.CompilerParams(
            dimension_semantics=("parallel",),
            vmem_limit_bytes=_VMEM_LIMIT),
    )(x3, g, b)


def _pallas_bn_two_pass(x3, g, b, *, eps, tc, tn, thw, ragged):
    n, c, hw = x3.shape
    m = float(n * hw)
    pw = 128 if thw % 128 == 0 else thw
    gn = n // tn
    gh = pl.cdiv(hw, thw) if ragged else hw // thw
    grid = (c // tc, gn, gh)

    x_spec = pl.BlockSpec((tn, tc, thw), lambda ci, ni, hi: (ni, ci, hi))
    stat_spec = pl.BlockSpec((tc, pw), lambda ci, ni, hi: (ci, 0))

    # Pass 1: lane-dense per-channel partial sums / sums of squares.
    psum, psq = pl.pallas_call(
        functools.partial(_bn_stats_kernel, thw=thw, pw=pw, hw=hw, ragged=ragged),
        out_shape=(jax.ShapeDtypeStruct((c, pw), jnp.float32),
                   jax.ShapeDtypeStruct((c, pw), jnp.float32)),
        grid=grid,
        in_specs=[x_spec],
        out_specs=(stat_spec, stat_spec),
        compiler_params=pltpu.CompilerParams(
            dimension_semantics=("parallel", "arbitrary", "arbitrary"),
            vmem_limit_bytes=_VMEM_LIMIT),
    )(x3)

    # Fold stats + affine into per-channel (scale, shift) ONCE (tiny (c,) ops).
    # NOTE: biased variance via E[x^2]-E[x]^2 in f32; can lose precision when
    # |mean| >> std (acceptable for BN-scale activations; fused path avoids it).
    sums = jnp.sum(psum, axis=1)
    sqs = jnp.sum(psq, axis=1)
    mean = sums / m
    var = jnp.maximum(sqs / m - mean * mean, 0.0)
    scale = g[:, 0] * jax.lax.rsqrt(var + eps)
    shift = b[:, 0] - mean * scale
    scale = scale.reshape(c, 1)
    shift = shift.reshape(c, 1)

    ch_spec = pl.BlockSpec((tc, 1), lambda ci, ni, hi: (ci, 0))

    # Pass 2: y = x * scale + shift, all grid axes parallel.
    y3 = pl.pallas_call(
        _bn_apply_kernel,
        out_shape=jax.ShapeDtypeStruct((n, c, hw), x3.dtype),
        grid=grid,
        in_specs=[x_spec, ch_spec, ch_spec],
        out_specs=x_spec,
        compiler_params=pltpu.CompilerParams(
            dimension_semantics=("parallel", "parallel", "parallel"),
            vmem_limit_bytes=_VMEM_LIMIT),
    )(x3, scale, shift)
    return y3


@functools.partial(jax.jit,
                   static_argnames=("eps", "force_two_pass", "block_bytes"))
def batchnorm2d_pallas(x, gamma, beta, eps=1e-5, force_two_pass=False,
                       block_bytes=None):
    """Training-mode BatchNorm2d on an NCHW tensor via Pallas TPU kernels."""
    n, c, h, w = x.shape
    hw = h * w
    x3 = x.reshape(n, c, hw)                      # free view of NCHW
    g = gamma.reshape(c, 1).astype(jnp.float32)   # affine params stay in f32
    b = beta.reshape(c, 1).astype(jnp.float32)

    unit = _sublane_unit(x.dtype)
    vmem = _VMEM_LIMIT

    # Fused single-pass fast path (2x|x| HBM traffic instead of 3x) when a
    # whole (n, tc, hw) channel slab fits comfortably in VMEM.
    if not force_two_pass:
        tc = _channel_tile(c, unit, lambda d: n * d * hw * 4 * 8 <= vmem)
        if tc is not None:
            y3 = _pallas_bn_fused(x3, g, b, eps=eps, tc=tc)
            return y3.reshape(n, c, h, w)

    # Two-pass path for large activations: size blocks from the VMEM budget
    # (~block_f32*6 working set in pass 2 incl. double buffering + f32 temps).
    max_block_f32 = (block_bytes if block_bytes is not None
                     else max(vmem // 6, 1 << 20))
    tc = _channel_tile(c, unit, lambda d: d <= 256) or c
    lane_budget = max(128, max_block_f32 // (tc * 4))

    if hw <= lane_budget:
        thw, ragged = hw, False
        tn = _largest_divisor_leq(n, max(1, lane_budget // max(hw, 1)))
    else:
        tn = 1
        cap = max(128, (lane_budget // 128) * 128)
        d = _largest_aligned_divisor_leq(hw, 128, cap)
        if d is not None:
            thw, ragged = d, False
        else:
            # No lane-aligned divisor <= budget: cdiv grid + masked stats.
            thw, ragged = cap, True

    y3 = _pallas_bn_two_pass(x3, g, b, eps=eps, tc=tc, tn=tn, thw=thw,
                             ragged=ragged)
    return y3.reshape(n, c, h, w)


# ----------------------------------------------------------------------------
# Module port
# ----------------------------------------------------------------------------
class FsBN:
    """JAX/Pallas port of fs_bn: BatchNorm2d on the high-frequency branch and
    (optionally) the low-frequency branch."""

    def __init__(self, channels, alpha):
        self.h_out = int((1 - alpha) * channels)
        self.l_out = int(alpha * channels)
        # PyTorch BatchNorm2d default affine init: weight=1, bias=0.
        self.h_gamma = jnp.ones((self.h_out,), jnp.float32)
        self.h_beta = jnp.zeros((self.h_out,), jnp.float32)
        if alpha != 0:
            self.l_gamma = jnp.ones((self.l_out,), jnp.float32)
            self.l_beta = jnp.zeros((self.l_out,), jnp.float32)
        else:
            self.l_gamma = None
            self.l_beta = None

    def __call__(self, x_h, x_l=None):
        y_h = batchnorm2d_pallas(x_h, self.h_gamma, self.h_beta)
        y_l = (batchnorm2d_pallas(x_l, self.l_gamma, self.l_beta)
               if x_l is not None else None)
        return (y_h, y_l)


def _bn_reference(x, gamma, beta, eps=1e-5):
    xf = x.astype(jnp.float32)
    mean = jnp.mean(xf, axis=(0, 2, 3), keepdims=True)
    var = jnp.mean((xf - mean) ** 2, axis=(0, 2, 3), keepdims=True)
    return (xf - mean) / jnp.sqrt(var + eps) * gamma.reshape(1, -1, 1, 1) + \
        beta.reshape(1, -1, 1, 1)


if __name__ == "__main__":
    channels = 8
    alpha = 0.5
    mod = FsBN(channels, alpha)

    key = jax.random.PRNGKey(0)
    k_h, k_l, k_2, k_bf = jax.random.split(key, 4)
    # high-frequency branch: full spatial; low-frequency branch: half spatial
    x_h = jax.random.normal(k_h, (2, mod.h_out, 16, 16), jnp.float32)
    x_l = jax.random.normal(k_l, (2, mod.l_out, 8, 8), jnp.float32)

    y_h, y_l = mod(x_h, x_l)
    jax.block_until_ready(y_h)
    jax.block_until_ready(y_l)

    ref_h = _bn_reference(x_h, mod.h_gamma, mod.h_beta)
    ref_l = _bn_reference(x_l, mod.l_gamma, mod.l_beta)
    assert jnp.max(jnp.abs(y_h - ref_h)) < 1e-4
    assert jnp.max(jnp.abs(y_l - ref_l)) < 1e-4
    assert y_h.shape == x_h.shape and y_l.shape == x_l.shape

    # Exercise the two-pass path (divisible grids, multi-step reduction):
    gamma2 = jnp.ones((16,), jnp.float32)
    beta2 = jnp.zeros((16,), jnp.float32)
    x2 = jax.random.normal(k_2, (4, 16, 32, 32), jnp.float32)
    ref2 = _bn_reference(x2, gamma2, beta2)
    # (a) reduction over the batch axis (grid N > 1)
    y2a = batchnorm2d_pallas(x2, gamma2, beta2, force_two_pass=True,
                             block_bytes=32 * 1024)
    # (b) reduction over batch + spatial tiles (grid N > 1, grid HW > 1)
    y2b = batchnorm2d_pallas(x2, gamma2, beta2, force_two_pass=True,
                             block_bytes=16 * 1024)
    jax.block_until_ready(y2b)
    assert jnp.max(jnp.abs(y2a - ref2)) < 1e-4
    assert jnp.max(jnp.abs(y2b - ref2)) < 1e-4

    # bf16 path (dtype-aware channel tile unit, f32 statistics).
    gamma3 = jnp.ones((32,), jnp.float32)
    beta3 = jnp.zeros((32,), jnp.float32)
    x3 = jax.random.normal(k_bf, (2, 32, 16, 16), jnp.float32).astype(jnp.bfloat16)
    y3 = batchnorm2d_pallas(x3, gamma3, beta3)
    jax.block_until_ready(y3)
    ref3 = _bn_reference(x3, gamma3, beta3)
    assert jnp.max(jnp.abs(y3.astype(jnp.float32) - ref3)) < 5e-2

    print("KERNEL_OK")
</pallas_src>

<mosaic_0001>
module attributes {stable_mosaic.version = 11 : i64} {
  func.func @_bn_fused_kernel(%arg0: i32, %arg1: memref<2x4x256xf32, #tpu.memory_space<vmem>>, %arg2: memref<4x1xf32, #tpu.memory_space<vmem>>, %arg3: memref<4x1xf32, #tpu.memory_space<vmem>>, %arg4: memref<2x4x256xf32, #tpu.memory_space<vmem>>) attributes {dimension_semantics = [#tpu.dimension_semantics<parallel>], iteration_bounds = array<i64: 1>, scalar_prefetch = 0 : i64, scratch_operands = 0 : i64, tpu.core_type = #tpu.core_type<tc>, window_params = [{transform_indices = @transform_0, window_bounds = array<i64: 2, 4, 256>}, {transform_indices = @transform_1, window_bounds = array<i64: 4, 1>}, {transform_indices = @transform_2, window_bounds = array<i64: 4, 1>}, {transform_indices = @transform_3, window_bounds = array<i64: 2, 4, 256>}]} {
    %c0 = arith.constant 0 : index
    %c0_0 = arith.constant 0 : index
    %c0_1 = arith.constant 0 : index
    %0 = vector.load %arg1[%c0, %c0_0, %c0_1] : memref<2x4x256xf32, #tpu.memory_space<vmem>>, vector<2x4x256xf32>
    %cst = arith.constant dense<0.000000e+00> : vector<2x4xf32>
    %1 = vector.multi_reduction <add>, %0, %cst [2] : vector<2x4x256xf32> to vector<2x4xf32>
    %2 = vector.shape_cast %1 : vector<2x4xf32> to vector<2x4x1xf32>
    %cst_2 = arith.constant dense<0.000000e+00> : vector<4x1xf32>
    %3 = vector.multi_reduction <add>, %2, %cst_2 [0] : vector<2x4x1xf32> to vector<4x1xf32>
    %cst_3 = arith.constant 0.001953125 : f32
    %4 = vector.broadcast %cst_3 : f32 to vector<4x1xf32>
    %5 = arith.mulf %3, %4 : vector<4x1xf32>
    %6 = vector.shape_cast %5 : vector<4x1xf32> to vector<1x4x1xf32>
    %7 = vector.broadcast %6 : vector<1x4x1xf32> to vector<2x4x256xf32>
    %8 = arith.subf %0, %7 : vector<2x4x256xf32>
    %9 = arith.mulf %8, %8 : vector<2x4x256xf32>
    %cst_4 = arith.constant dense<0.000000e+00> : vector<2x4xf32>
    %10 = vector.multi_reduction <add>, %9, %cst_4 [2] : vector<2x4x256xf32> to vector<2x4xf32>
    %11 = vector.shape_cast %10 : vector<2x4xf32> to vector<2x4x1xf32>
    %cst_5 = arith.constant dense<0.000000e+00> : vector<4x1xf32>
    %12 = vector.multi_reduction <add>, %11, %cst_5 [0] : vector<2x4x1xf32> to vector<4x1xf32>
    %cst_6 = arith.constant 0.001953125 : f32
    %13 = vector.broadcast %cst_6 : f32 to vector<4x1xf32>
    %14 = arith.mulf %12, %13 : vector<4x1xf32>
    %c0_7 = arith.constant 0 : index
    %c0_8 = arith.constant 0 : index
    %15 = vector.load %arg2[%c0_7, %c0_8] : memref<4x1xf32, #tpu.memory_space<vmem>>, vector<4x1xf32>
    %cst_9 = arith.constant 9.99999974E-6 : f32
    %16 = vector.broadcast %cst_9 : f32 to vector<4x1xf32>
    %17 = arith.addf %14, %16 : vector<4x1xf32>
    %18 = math.rsqrt %17 : vector<4x1xf32>
    %19 = arith.mulf %15, %18 : vector<4x1xf32>
    %20 = vector.shape_cast %19 : vector<4x1xf32> to vector<1x4x1xf32>
    %21 = vector.broadcast %20 : vector<1x4x1xf32> to vector<2x4x256xf32>
    %22 = arith.mulf %8, %21 : vector<2x4x256xf32>
    %c0_10 = arith.constant 0 : index
    %c0_11 = arith.constant 0 : index
    %23 = vector.load %arg3[%c0_10, %c0_11] : memref<4x1xf32, #tpu.memory_space<vmem>>, vector<4x1xf32>
    %24 = vector.shape_cast %23 : vector<4x1xf32> to vector<1x4x1xf32>
    %25 = vector.broadcast %24 : vector<1x4x1xf32> to vector<2x4x256xf32>
    %26 = arith.addf %22, %25 : vector<2x4x256xf32>
    %c0_12 = arith.constant 0 : index
    %c0_13 = arith.constant 0 : index
    %c0_14 = arith.constant 0 : index
    %27 = vector.load %arg4[%c0_12, %c0_13, %c0_14] : memref<2x4x256xf32, #tpu.memory_space<vmem>>, vector<2x4x256xf32>
    tpu.vector_store %arg4[%c0_12, %c0_13, %c0_14], %26 {strides = array<i32>} : memref<2x4x256xf32, #tpu.memory_space<vmem>>, vector<2x4x256xf32>,
    return
  }
  func.func @transform_0(%arg0: i32) -> (i32, i32, i32) {
    %c0_i32 = arith.constant 0 : i32
    %c0_i32_0 = arith.constant 0 : i32
    %c0_i32_1 = arith.constant 0 : i32
    return %c0_i32, %arg0, %c0_i32_0 : i32, i32, i32
  }
  func.func @transform_1(%arg0: i32) -> (i32, i32) {
    %c0_i32 = arith.constant 0 : i32
    %c0_i32_0 = arith.constant 0 : i32
    return %arg0, %c0_i32 : i32, i32
  }
  func.func @transform_2(%arg0: i32) -> (i32, i32) {
    %c0_i32 = arith.constant 0 : i32
    %c0_i32_0 = arith.constant 0 : i32
    return %arg0, %c0_i32 : i32, i32
  }
  func.func @transform_3(%arg0: i32) -> (i32, i32, i32) {
    %c0_i32 = arith.constant 0 : i32
    %c0_i32_0 = arith.constant 0 : i32
    %c0_i32_1 = arith.constant 0 : i32
    return %c0_i32, %arg0, %c0_i32_0 : i32, i32, i32
  }
}

</mosaic_0001>

<bundles_post_ra>
// kernel: batchnorm2d_pallas.1
= control target key start
LH: loop header
LB: loop body
LE: loop exit
PB: predicated region body
PF: predicated region fallthrough
CT: control target
= control target key end

     0   :  { %vm22_vm0 = vcmask 1043456   ;;  %v117_v10 = vmov 839922192   ;;  %v41_v12 = vlaneseq  ;;  %v118_v35 = vmov 0   ;;  %s169_s0 = inlined_call_operand.vmem [shape: f32[2,4,256], index: 0, kind: input, shape index: {}]   ;;  %s170_s2 = inlined_call_operand.vmem [shape: f32[4,1], index: 2, kind: input, shape index: {}]   ;;  %s171_s1 = inlined_call_operand.vmem [shape: f32[4,1], index: 1, kind: input, shape index: {}]   ;;  %s172_s3 = inlined_call_operand.vmem [shape: f32[2,4,256], index: 3, kind: output, shape index: {}]  }
   0x1   :  { %v14_v0 = vld [vmem:[%s169_s0] sm:$0xff]  ;;  %v15_v1 = vld [vmem:[%s169_s0 + $0x8] sm:$0xff]  ;;  %v39_v11 = vunpack.c.l.s4 %v117_v10  ;;  %111 = vset.pattern.permute.xlu0 %v118_v35  ;;  %112 = vset.pattern.permute.xlu1 %v118_v35 }
   0x2   :  { %v18_v2 = vcombine.high %v14_v0, %v14_v0  ;;  %v23_v3 = vsel %vm22_vm0, %v14_v0, 0.0  ;;  %v19_v4 = vcombine.high %v15_v1, %v15_v1  ;;  %v28_v6 = vsel %vm22_vm0, %v15_v1, 0.0  ;;  %v88_v36 = vld [vmem:[%s170_s2] sm:$0xf] }
   0x3   :  { %v40_v14 = vunpack.c.0.s8 %v39_v11  ;;  %v42_v15 = vshrl.u32 %v41_v12, 7  ;;  %v70_v44 = vld [vmem:[%s171_s1] sm:$0xf] }
   0x4   :  { %v24_v5 = vsel %vm22_vm0, %v18_v2, 0.0  ;;  %v29_v7 = vsel %vm22_vm0, %v19_v4, 0.0 }
   0x5   :  { %v25_v8 = vadd.f32 %v24_v5, %v23_v3  ;;  %v30_v9 = vadd.f32 %v29_v7, %v28_v6  ;;  %v43_v19 = vsub.s32 %v40_v14, %v42_v15 }
   0x7   :  { %26 = vadd.xlane.f32.xlu0 %v25_v8 }
   0xb   :  { %31 = vadd.xlane.f32.xlu0 %v30_v9 }
  0x94   :  { %v27_v13 = vpop.xlane.xlu0 %26 }
  0x95   :  { %v33_v17 = vsel %vm22_vm0, %v27_v13, 0.0 }
  0x98   :  { %v32_v16 = vpop.xlane.xlu0 %31 }
  0x99   :  { %v34_v18 = vsel %vm22_vm0, %v32_v16, 0.0 }
  0x9a   :  { %v35_v20 = vadd.f32 %v34_v18, %v33_v17 }
  0x9c   :  { %v36_v21 = vmul.f32 0.001953125, %v35_v20 }
  0x9e   :  { %v44_v22 = vrot.slane %v36_v21, %v43_v19 }
  0xa0   :  { %v47_v23 = vsub.f32 %v15_v1, %v44_v22  ;;  %v46_v24 = vsub.f32 %v14_v0, %v44_v22 }
  0xa2   :  { %v48_v25 = vmul.f32 %v46_v24, %v46_v24  ;;  %v49_v26 = vmul.f32 %v47_v23, %v47_v23 }
  0xa4   :  { %v52_v27 = vcombine.high %v48_v25, %v48_v25  ;;  %v53_v28 = vcombine.high %v49_v26, %v49_v26  ;;  %v56_v29 = vsel %vm22_vm0, %v48_v25, 0.0  ;;  %v61_v33 = vsel %vm22_vm0, %v49_v26, 0.0 }
  0xa6   :  { %v57_v30 = vsel %vm22_vm0, %v52_v27, 0.0  ;;  %v62_v32 = vsel %vm22_vm0, %v53_v28, 0.0 }
  0xa7   :  { %v58_v31 = vadd.f32 %v57_v30, %v56_v29  ;;  %v63_v34 = vadd.f32 %v62_v32, %v61_v33 }
  0xa9   :  { %59 = vadd.xlane.f32.xlu1 %v58_v31 }
  0xad   :  { %64 = vadd.xlane.f32.xlu1 %v63_v34 }
  0xbe   :  { %91 = vperm.xlu1 %112, %v88_v36  }
 0x136   :  { %v60_v37 = vpop.xlane.xlu1 %59 }
 0x137   :  { %v66_v39 = vsel %vm22_vm0, %v60_v37, 0.0 }
 0x13a   :  { %v65_v38 = vpop.xlane.xlu1 %64 }
 0x13b   :  { %v67_v40 = vsel %vm22_vm0, %v65_v38, 0.0 }
 0x13c   :  { %v68_v41 = vadd.f32 %v67_v40, %v66_v39 }
 0x13e   :  { %v69_v42 = vmul.f32 0.001953125, %v68_v41  ;;  %v92_v47 = vpop.permute.xlu1 %91 }
 0x13f   :  { %v99_v50 = vrot.slane %v92_v47, %v43_v19 }
 0x140   :  { %v71_v43 = vadd.f32 1e-05, %v69_v42 }
 0x142   :  { %115 = vrsqrt.f32 %v71_v43 }
 0x14c   :  { %v116_v45 = vpop.eup %115 }
 0x14d   :  { %v73_v46 = vmul.f32 %v116_v45, %v70_v44 }
 0x14f   :  { %76 = vperm.xlu0 %111, %v73_v46  }
 0x1ce   :  { %v77_v48 = vpop.permute.xlu0 %76 }
 0x1cf   :  { %v84_v49 = vrot.slane %v77_v48, %v43_v19 }
 0x1d1   :  { %v86_v51 = vmul.f32 %v84_v49, %v46_v24  ;;  %v87_v52 = vmul.f32 %v84_v49, %v47_v23 }
 0x1d3   :  { %v101_v53 = vadd.f32 %v99_v50, %v86_v51  ;;  %v102_v54 = vadd.f32 %v99_v50, %v87_v52 }
 0x1d5   :  { %103 = vst [vmem:[%s172_s3] sm:$0xff] %v101_v53  ;;  %104 = vst [vmem:[%s172_s3 + $0x8] sm:$0xff] %v102_v54 }

</bundles_post_ra>
